<compile_context>
chip_gen: v7x
topology: tpu7x:2x2x1
jax: 0.10.0
libtpu: 0.0.40
codegen_flags: <defaults>
</compile_context>

<pallas_src>
import functools

import jax
import jax.numpy as jnp
from jax import lax
from jax.experimental import pallas as pl
from jax.experimental.pallas import tpu as pltpu

COST_RATIO = 1000.0
DELTA = 1.0

_MAX_TILE_ROWS = 1024   # 1024 x 512 f32 tile = 2 MiB (x2 pipeline buffers = 4 MiB)


def _round_up(x, m):
    return ((x + m - 1) // m) * m


def _cdiv(a, b):
    return -(-a // b)


def _sublane_granularity(dtype):
    # Native sublane packing of the streamed tile: f32 -> 8, bf16 -> 16, int8 -> 32.
    return max(8, 32 // jnp.dtype(dtype).itemsize)


# ---------------------------------------------------------------------------
# Kernel: one (tile_rows, lane) tile -> VPU-only accumulation of
#   sum(relu(x)) and sum(huber(relu(-x))) into resident (8, lane) f32 outputs.
# ---------------------------------------------------------------------------
def _backscatter_kernel(x_ref, pos_ref, neg_ref, *, n_seq, tile_rows, lane,
                        valid_rows, need_mask, delta):
    p = pl.program_id(0)            # parallel slice (megacore sharding on v7x)
    s = pl.program_id(1)            # streaming / reduction step

    @pl.when(s == 0)
    def _init():
        pos_ref[...] = jnp.zeros_like(pos_ref)
        neg_ref[...] = jnp.zeros_like(neg_ref)

    # Stream the native dtype from HBM; widen on the VPU.
    x = x_ref[...].astype(jnp.float32)

    if need_mask:
        # Zero rows past the end of the real data (ragged last tile and the
        # balanced-grid dummy step).  Use where (not multiply) so undefined
        # out-of-bounds data (possibly NaN) cannot leak into the sums.
        base_row = (p * n_seq + s) * tile_rows
        row = base_row + lax.broadcasted_iota(jnp.int32, x.shape, 0)
        x = jnp.where(row < valid_rows, x, 0.0)

    pos = jnp.maximum(x, 0.0)       # relu(direct)
    neg = pos - x                   # == relu(-direct)
    m = jnp.minimum(neg, delta)     # branch-free adaptive Huber
    huber = m * (neg - 0.5 * m)     # == 0.5*e^2 if e<=delta else delta*(e-0.5*delta)

    # Per-step accumulation is pure vreg VPU adds: fold 8-row groups into the
    # resident (8, lane) accumulators; the cross-lane reduce is deferred to the
    # wrapper (once per call, ~KBs).
    def fold(t):
        return jnp.sum(t.reshape(tile_rows // 8, 8, lane), axis=0)

    pos_ref[...] += fold(pos)
    neg_ref[...] += fold(huber)


# ---------------------------------------------------------------------------
# Wrapper reproducing BackscatterLoss.forward(direct)
# ---------------------------------------------------------------------------
def backscatter_loss(direct, *, cost_ratio=COST_RATIO, delta=DELTA,
                     max_tile_rows=_MAX_TILE_ROWS):
    x = direct.reshape(-1)          # collapse dims: layout-compatible, free
    total = int(x.shape[0])
    assert total > 0, "empty input"

    # Lane width of the streamed 2-D view.  Prefer 512; fall back so that the
    # reshape needs no padding (a pad would be an extra full HBM copy).
    lane = next((c for c in (512, 256, 128) if total % c == 0), None)
    if lane is None:
        # TODO(synk): rare ragged-numel fallback; costs one extra HBM copy.
        lane = 128
        x = jnp.pad(x, (0, (-total) % lane))    # zeros contribute 0 to both sums
    rows = x.shape[0] // lane
    x2 = x.reshape(rows, lane)                  # still a free reshape

    sub = _sublane_granularity(x.dtype)
    tile_rows = _round_up(min(max_tile_rows, rows), sub)
    n_tiles = _cdiv(rows, tile_rows)
    n_par = 2 if n_tiles >= 2 else 1            # 2 TensorCores on v7x; harmless elsewhere
    n_seq = _cdiv(n_tiles, n_par)
    need_mask = n_par * n_seq * tile_rows > rows
    last_block = n_tiles - 1                    # clamp dummy grid steps in-bounds

    kernel = functools.partial(
        _backscatter_kernel, n_seq=n_seq, tile_rows=tile_rows, lane=lane,
        valid_rows=rows, need_mask=need_mask, delta=float(delta))

    pos_acc, neg_acc = pl.pallas_call(
        kernel,
        out_shape=(jax.ShapeDtypeStruct((n_par, 8, lane), jnp.float32),
                   jax.ShapeDtypeStruct((n_par, 8, lane), jnp.float32)),
        grid=(n_par, n_seq),
        in_specs=[pl.BlockSpec(
            (tile_rows, lane),
            lambda p, s: (jnp.minimum(p * n_seq + s, last_block), 0))],
        out_specs=(pl.BlockSpec((None, 8, lane), lambda p, s: (p, 0, 0)),
                   pl.BlockSpec((None, 8, lane), lambda p, s: (p, 0, 0))),
        compiler_params=pltpu.CompilerParams(
            dimension_semantics=("parallel", "arbitrary")),
    )(x2)

    inv_n = 1.0 / float(total)                  # means over the TRUE element count
    pos_mean = jnp.sum(pos_acc) * inv_n
    neg_mean = jnp.sum(neg_acc) * inv_n
    return cost_ratio * neg_mean + pos_mean


# ---------------------------------------------------------------------------
# Pure-JAX reference (same math, no Pallas) used as a sanity check.
# ---------------------------------------------------------------------------
def _reference_loss(direct, cost_ratio=COST_RATIO, delta=DELTA):
    d = direct.astype(jnp.float32)
    pos = jnp.mean(jnp.maximum(d, 0.0))
    neg = jnp.maximum(-d, 0.0)
    huber = jnp.where(neg <= delta, 0.5 * neg * neg, delta * (neg - 0.5 * delta))
    return cost_ratio * jnp.mean(huber) + pos


if __name__ == "__main__":
    key = jax.random.PRNGKey(0)
    k1, k2, k3 = jax.random.split(key, 3)
    jitted = jax.jit(backscatter_loss)

    # (B, C, H, W) image-like tensor; values span both signs and both Huber branches.
    x1 = jax.random.uniform(k1, (2, 3, 16, 16), jnp.float32, minval=-2.0, maxval=2.0)
    loss1 = jax.block_until_ready(jitted(x1))
    ref1 = _reference_loss(x1)
    assert jnp.isfinite(loss1), "non-finite loss"
    assert jnp.allclose(loss1, ref1, rtol=2e-4, atol=1e-4), (loss1, ref1)

    # Multi-tile / megacore-balanced path: 38 rows x 512 lanes with 8-row tiles
    # -> 5 real tiles on a (2, 3) grid (one clamped+masked dummy step, ragged tail).
    x2 = jax.random.uniform(k2, (2, 19, 32, 16), jnp.float32, minval=-2.0, maxval=2.0)
    loss2 = jax.block_until_ready(
        jax.jit(functools.partial(backscatter_loss, max_tile_rows=8))(x2))
    ref2 = _reference_loss(x2)
    assert jnp.allclose(loss2, ref2, rtol=2e-4, atol=1e-4), (loss2, ref2)

    # Native-dtype streaming (bf16 in HBM, f32 math inside the kernel).
    x3 = jax.random.uniform(k3, (2, 4, 32, 32), jnp.float32,
                            minval=-2.0, maxval=2.0).astype(jnp.bfloat16)
    loss3 = jax.block_until_ready(jitted(x3))
    ref3 = _reference_loss(x3)
    assert jnp.allclose(loss3, ref3, rtol=2e-3, atol=1e-3), (loss3, ref3)

    print("KERNEL_OK")
</pallas_src>

<mosaic_0001>
module attributes {stable_mosaic.version = 11 : i64} {
  func.func @_backscatter_kernel(%arg0: i32, %arg1: i32, %arg2: memref<8x512xf32, #tpu.memory_space<vmem>>, %arg3: memref<1x8x512xf32, #tpu.memory_space<vmem>>, %arg4: memref<1x8x512xf32, #tpu.memory_space<vmem>>) attributes {dimension_semantics = [#tpu.dimension_semantics<parallel>, #tpu.dimension_semantics<arbitrary>], iteration_bounds = array<i64: 1, 1>, scalar_prefetch = 0 : i64, scratch_operands = 0 : i64, tpu.core_type = #tpu.core_type<tc>, window_params = [{transform_indices = @transform_0, window_bounds = array<i64: 8, 512>}, {transform_indices = @transform_1, window_bounds = array<i64: 1, 8, 512>}, {transform_indices = @transform_2, window_bounds = array<i64: 1, 8, 512>}]} {
    %c0_i32 = arith.constant 0 : i32
    %0 = arith.cmpi eq, %arg1, %c0_i32 : i32
    %1 = arith.extui %0 : i1 to i32
    %c0_i32_0 = arith.constant 0 : i32
    %2 = arith.cmpi ne, %1, %c0_i32_0 : i32
    scf.if %2 {
      %cst_19 = arith.constant 0.000000e+00 : f32
      %39 = vector.broadcast %cst_19 : f32 to vector<8x512xf32>
      %c0_20 = arith.constant 0 : index
      %c0_21 = arith.constant 0 : index
      %c0_22 = arith.constant 0 : index
      %40 = vector.load %arg3[%c0_20, %c0_21, %c0_22] : memref<1x8x512xf32, #tpu.memory_space<vmem>>, vector<1x8x512xf32>
      %41 = vector.shape_cast %40 : vector<1x8x512xf32> to vector<8x512xf32>
      %42 = vector.shape_cast %39 : vector<8x512xf32> to vector<1x8x512xf32>
      tpu.vector_store %arg3[%c0_20, %c0_21, %c0_22], %42 {strides = array<i32>} : memref<1x8x512xf32, #tpu.memory_space<vmem>>, vector<1x8x512xf32>,
      %cst_23 = arith.constant 0.000000e+00 : f32
      %43 = vector.broadcast %cst_23 : f32 to vector<8x512xf32>
      %c0_24 = arith.constant 0 : index
      %c0_25 = arith.constant 0 : index
      %c0_26 = arith.constant 0 : index
      %44 = vector.load %arg4[%c0_24, %c0_25, %c0_26] : memref<1x8x512xf32, #tpu.memory_space<vmem>>, vector<1x8x512xf32>
      %45 = vector.shape_cast %44 : vector<1x8x512xf32> to vector<8x512xf32>
      %46 = vector.shape_cast %43 : vector<8x512xf32> to vector<1x8x512xf32>
      tpu.vector_store %arg4[%c0_24, %c0_25, %c0_26], %46 {strides = array<i32>} : memref<1x8x512xf32, #tpu.memory_space<vmem>>, vector<1x8x512xf32>,
    } else {
    }
    %c0 = arith.constant 0 : index
    %c0_1 = arith.constant 0 : index
    %3 = vector.load %arg2[%c0, %c0_1] : memref<8x512xf32, #tpu.memory_space<vmem>>, vector<8x512xf32>
    %c1_i32 = arith.constant 1 : i32
    %4 = arith.muli %arg0, %c1_i32 : i32
    %5 = arith.addi %4, %arg1 : i32
    %c8_i32 = arith.constant 8 : i32
    %6 = arith.muli %5, %c8_i32 : i32
    %7 = tpu.iota {dimensions = array<i32: 0>} : vector<8x512xi32>
    %8 = vector.broadcast %6 : i32 to vector<8x512xi32>
    %9 = arith.addi %8, %7 : vector<8x512xi32>
    %c3_i32 = arith.constant 3 : i32
    %10 = vector.broadcast %c3_i32 : i32 to vector<8x512xi32>
    %11 = arith.cmpi slt, %9, %10 : vector<8x512xi32>
    %cst = arith.constant 0.000000e+00 : f32
    %12 = vector.broadcast %cst : f32 to vector<8x512xf32>
    %13 = arith.select %11, %3, %12 : vector<8x512xi1>, vector<8x512xf32>
    %cst_2 = arith.constant 0.000000e+00 : f32
    %14 = vector.broadcast %cst_2 : f32 to vector<8x512xf32>
    %15 = arith.maximumf %13, %14 : vector<8x512xf32>
    %16 = arith.subf %15, %13 : vector<8x512xf32>
    %cst_3 = arith.constant 1.000000e+00 : f32
    %17 = vector.broadcast %cst_3 : f32 to vector<8x512xf32>
    %18 = arith.minimumf %16, %17 : vector<8x512xf32>
    %cst_4 = arith.constant 5.000000e-01 : f32
    %19 = vector.broadcast %cst_4 : f32 to vector<8x512xf32>
    %20 = arith.mulf %19, %18 : vector<8x512xf32>
    %21 = arith.subf %16, %20 : vector<8x512xf32>
    %22 = arith.mulf %18, %21 : vector<8x512xf32>
    %c0_5 = arith.constant 0 : index
    %c0_6 = arith.constant 0 : index
    %c0_7 = arith.constant 0 : index
    %23 = vector.load %arg3[%c0_5, %c0_6, %c0_7] : memref<1x8x512xf32, #tpu.memory_space<vmem>>, vector<1x8x512xf32>
    %24 = vector.shape_cast %23 : vector<1x8x512xf32> to vector<8x512xf32>
    %25 = vector.shape_cast %15 : vector<8x512xf32> to vector<1x8x512xf32>
    %cst_8 = arith.constant dense<0.000000e+00> : vector<8x512xf32>
    %26 = vector.multi_reduction <add>, %25, %cst_8 [0] : vector<1x8x512xf32> to vector<8x512xf32>
    %27 = arith.addf %24, %26 : vector<8x512xf32>
    %c0_9 = arith.constant 0 : index
    %c0_10 = arith.constant 0 : index
    %c0_11 = arith.constant 0 : index
    %28 = vector.load %arg3[%c0_9, %c0_10, %c0_11] : memref<1x8x512xf32, #tpu.memory_space<vmem>>, vector<1x8x512xf32>
    %29 = vector.shape_cast %28 : vector<1x8x512xf32> to vector<8x512xf32>
    %30 = vector.shape_cast %27 : vector<8x512xf32> to vector<1x8x512xf32>
    tpu.vector_store %arg3[%c0_9, %c0_10, %c0_11], %30 {strides = array<i32>} : memref<1x8x512xf32, #tpu.memory_space<vmem>>, vector<1x8x512xf32>,
    %c0_12 = arith.constant 0 : index
    %c0_13 = arith.constant 0 : index
    %c0_14 = arith.constant 0 : index
    %31 = vector.load %arg4[%c0_12, %c0_13, %c0_14] : memref<1x8x512xf32, #tpu.memory_space<vmem>>, vector<1x8x512xf32>
    %32 = vector.shape_cast %31 : vector<1x8x512xf32> to vector<8x512xf32>
    %33 = vector.shape_cast %22 : vector<8x512xf32> to vector<1x8x512xf32>
    %cst_15 = arith.constant dense<0.000000e+00> : vector<8x512xf32>
    %34 = vector.multi_reduction <add>, %33, %cst_15 [0] : vector<1x8x512xf32> to vector<8x512xf32>
    %35 = arith.addf %32, %34 : vector<8x512xf32>
    %c0_16 = arith.constant 0 : index
    %c0_17 = arith.constant 0 : index
    %c0_18 = arith.constant 0 : index
    %36 = vector.load %arg4[%c0_16, %c0_17, %c0_18] : memref<1x8x512xf32, #tpu.memory_space<vmem>>, vector<1x8x512xf32>
    %37 = vector.shape_cast %36 : vector<1x8x512xf32> to vector<8x512xf32>
    %38 = vector.shape_cast %35 : vector<8x512xf32> to vector<1x8x512xf32>
    tpu.vector_store %arg4[%c0_16, %c0_17, %c0_18], %38 {strides = array<i32>} : memref<1x8x512xf32, #tpu.memory_space<vmem>>, vector<1x8x512xf32>,
    return
  }
  func.func @transform_0(%arg0: i32, %arg1: i32) -> (i32, i32) {
    %c1_i32 = arith.constant 1 : i32
    %0 = arith.muli %arg0, %c1_i32 : i32
    %1 = arith.addi %0, %arg1 : i32
    %c0_i32 = arith.constant 0 : i32
    %2 = arith.minsi %1, %c0_i32 : i32
    %c0_i32_0 = arith.constant 0 : i32
    %c0_i32_1 = arith.constant 0 : i32
    return %2, %c0_i32_0 : i32, i32
  }
  func.func @transform_1(%arg0: i32, %arg1: i32) -> (i32, i32, i32) {
    %c0_i32 = arith.constant 0 : i32
    %c0_i32_0 = arith.constant 0 : i32
    %c0_i32_1 = arith.constant 0 : i32
    return %arg0, %c0_i32, %c0_i32_0 : i32, i32, i32
  }
  func.func @transform_2(%arg0: i32, %arg1: i32) -> (i32, i32, i32) {
    %c0_i32 = arith.constant 0 : i32
    %c0_i32_0 = arith.constant 0 : i32
    %c0_i32_1 = arith.constant 0 : i32
    return %arg0, %c0_i32, %c0_i32_0 : i32, i32, i32
  }
}

</mosaic_0001>

<bundles_post_ra>
// kernel: backscatter_loss.1
= control target key start
LH: loop header
LB: loop body
LE: loop exit
PB: predicated region body
PF: predicated region fallthrough
CT: control target
= control target key end

     0   :  { %v78_v0 = vlaneseq  ;;  %s227_s0 = inlined_call_operand.vmem [shape: f32[3,512], index: 0, kind: input, shape index: {}]   ;;  %s228_s1 = inlined_call_operand.vmem [shape: f32[1,8,512], index: 1, kind: output, shape index: {0}]   ;;  %s229_s2 = inlined_call_operand.vmem [shape: f32[1,8,512], index: 2, kind: output, shape index: {1}]  }
   0x1   :  { %v170_v1 = vld [vmem:[%s227_s0] ss:$16 sps:$4 sm:$0xff]   ;;  %v172_v3 = vld [vmem:[%s227_s0 + $0x4] ss:$16 sps:$4 sm:$0xff]   ;;  %v173_v4 = vld [vmem:[%s227_s0 + $0x8] ss:$16 sps:$4 sm:$0xff]  }
   0x2   :  { %v79_v2 = vshrl.u32 %v78_v0, 7  ;;  %v175_v5 = vld [vmem:[%s227_s0 + $0xc] ss:$16 sps:$4 sm:$0xff]  }
   0x4   :  { %vm82_vm0 = vcmp.lt.s32.totalorder %v79_v2, 3 }
   0x5   :  { %v95_v6 = vsel %vm82_vm0, %v170_v1, 0.0  ;;  %v96_v7 = vsel %vm82_vm0, %v172_v3, 0.0  ;;  %v97_v8 = vsel %vm82_vm0, %v173_v4, 0.0  ;;  %v98_v9 = vsel %vm82_vm0, %v175_v5, 0.0 }
   0x6   :  { %v99_v10 = vmax.f32 %v95_v6, 0.0  ;;  %v100_v11 = vmax.f32 %v96_v7, 0.0  ;;  %v101_v12 = vmax.f32 %v97_v8, 0.0  ;;  %v102_v13 = vmax.f32 %v98_v9, 0.0 }
   0x8   :  { %v103_v14 = vsub.f32 %v99_v10, %v95_v6  ;;  %v104_v15 = vsub.f32 %v100_v11, %v96_v7  ;;  %v105_v16 = vsub.f32 %v101_v12, %v97_v8  ;;  %v106_v17 = vsub.f32 %v102_v13, %v98_v9  ;;  %135 = vst [vmem:[%s228_s1] sm:$0xff] %v99_v10 }
   0x9   :  { %136 = vst [vmem:[%s228_s1 + $0x8] sm:$0xff] %v100_v11  ;;  %137 = vst [vmem:[%s228_s1 + $0x10] sm:$0xff] %v101_v12 }
   0xa   :  { %v107_v18 = vmin.f32 %v103_v14, 1.0  ;;  %v108_v19 = vmin.f32 %v104_v15, 1.0  ;;  %138 = vst [vmem:[%s228_s1 + $0x18] sm:$0xff] %v102_v13  ;;  %v109_v20 = vmin.f32 %v105_v16, 1.0  ;;  %v110_v21 = vmin.f32 %v106_v17, 1.0 }
   0xc   :  { %v111_v22 = vmul.f32 0.5, %v107_v18  ;;  %v112_v23 = vmul.f32 0.5, %v108_v19  ;;  %v113_v24 = vmul.f32 0.5, %v109_v20  ;;  %v114_v25 = vmul.f32 0.5, %v110_v21 }
   0xe   :  { %v115_v26 = vsub.f32 %v103_v14, %v111_v22  ;;  %v116_v27 = vsub.f32 %v104_v15, %v112_v23  ;;  %v117_v28 = vsub.f32 %v105_v16, %v113_v24  ;;  %v118_v29 = vsub.f32 %v106_v17, %v114_v25 }
  0x10   :  { %v119_v30 = vmul.f32 %v115_v26, %v107_v18  ;;  %v120_v31 = vmul.f32 %v116_v27, %v108_v19  ;;  %v121_v32 = vmul.f32 %v117_v28, %v109_v20  ;;  %v122_v33 = vmul.f32 %v118_v29, %v110_v21 }
  0x12   :  { %151 = vst [vmem:[%s229_s2] sm:$0xff] %v119_v30  ;;  %152 = vst [vmem:[%s229_s2 + $0x8] sm:$0xff] %v120_v31 }
  0x13   :  { %153 = vst [vmem:[%s229_s2 + $0x10] sm:$0xff] %v121_v32  ;;  %154 = vst [vmem:[%s229_s2 + $0x18] sm:$0xff] %v122_v33 }

</bundles_post_ra>
